<compile_context>
chip_gen: v5e
topology: v5e:2x2
jax: 0.10.0
libtpu: 0.0.40
codegen_flags: <defaults>
</compile_context>

<pallas_src>
import functools

import jax
import jax.numpy as jnp
from jax.experimental import pallas as pl
from jax.experimental.pallas import tpu as pltpu

PRIMITIVES = ['MB6_3x3_se0.25', 'MB6_5x5_se0.25']
_KSIZE = {'MB6_3x3_se0.25': 3, 'MB6_5x5_se0.25': 5}
_EXPAND = 6
_SE_RATIO = 0.25
_LANE = 128
_W_MARGIN = 8   # sublane-aligned left margin of the in-VMEM padded plane


def _round_up(x, m):
    return (x + m - 1) // m * m


def _pick_row_tile(m, cap=512):
    """Largest row tile <= cap that divides m and is a multiple of 8, else m."""
    if m <= cap:
        return m
    for cand in range(cap, 7, -1):
        if m % cand == 0 and cand % 8 == 0:
            return cand
    return m


# ---------------------------------------------------------------------------
# Kernel 1: expand (1x1 conv + ReLU) -> in-VMEM pad -> KxK depthwise + ReLU
#           -> SE partial pool.  One grid step == one image.
# ---------------------------------------------------------------------------
def _expand_dw_pool_kernel(x_ref, we_ref, be_ref, wd_ref, bd_ref,
                           dw_ref, pool_ref, pad_ref,
                           *, H, W, K, stride, Ho, Wo):
    p = K // 2
    C = pad_ref.shape[-1]          # Cexp padded to a multiple of 128 lanes

    # ---- 1x1 expand conv (BN scale folded into bf16 weights) + bias + ReLU --
    y2d = jnp.dot(x_ref[0].astype(jnp.bfloat16), we_ref[...],
                  preferred_element_type=jnp.float32)              # (H*W, C)
    y2d = jnp.maximum(y2d + be_ref[...], 0.0)

    # ---- zero-padded spatial plane kept entirely in VMEM (no HBM pad pass) --
    # Interior is stored at a sublane-aligned column offset (_W_MARGIN=8).
    # NOTE: the reshape is layout-trivial when W is a multiple of 8.
    pad_ref[...] = jnp.zeros_like(pad_ref)
    pad_ref[p:p + H, _W_MARGIN:_W_MARGIN + W, :] = y2d.reshape(H, W, C)

    # ---- KxK depthwise conv; stride is folded into the tap reads ------------
    acc = jnp.zeros((Ho, Wo, C), jnp.float32)
    for dy in range(K):                     # static unroll over the KxK taps
        for dx in range(K):
            col = _W_MARGIN - p + dx
            if stride == 1:
                patch = pad_ref[dy:dy + Ho, col:col + Wo, :]
            else:
                patch = pad_ref[pl.ds(dy, Ho, stride=stride),
                                pl.ds(col, Wo, stride=stride), :]
            tap = dy * K + dx
            acc = acc + patch * wd_ref[tap:tap + 1, :]            # (1,C) bcast
    dwv = jnp.maximum(acc + bd_ref[...], 0.0)                      # (Ho,Wo,C)

    dw_ref[0] = dwv.reshape(Ho * Wo, C)
    # SE partial pool: spatial sum; normalized to a mean in kernel 2.
    pool_ref[...] = jnp.sum(dwv, axis=(0, 1), keepdims=True)


def _expand_dw_pool(x3, prm, H, W, stride):
    """x3: (N, H*W, Cin) -> dw (N, Ho*Wo, Cexp_p), pool (N, 1, Cexp_p)."""
    N, _, Cin = x3.shape
    K = prm['k']
    Cexp = prm['w_exp'].shape[1]
    p = K // 2
    Ho = -(-H // stride)
    Wo = -(-W // stride)
    M = Ho * Wo
    HS = H + 2 * p
    WS = W + 2 * _W_MARGIN

    kern = functools.partial(_expand_dw_pool_kernel, H=H, W=W, K=K,
                             stride=stride, Ho=Ho, Wo=Wo)
    flops = int(2 * N * (H * W * Cin * Cexp + K * K * M * Cexp))
    bytes_acc = int(4 * N * (H * W * Cin + M * Cexp + Cexp))

    dw, pool = pl.pallas_call(
        kern,
        out_shape=(jax.ShapeDtypeStruct((N, M, Cexp), jnp.float32),
                   jax.ShapeDtypeStruct((N, 1, Cexp), jnp.float32)),
        grid_spec=pltpu.PrefetchScalarGridSpec(
            num_scalar_prefetch=0,
            grid=(N,),
            in_specs=[
                pl.BlockSpec((1, H * W, Cin), lambda n: (n, 0, 0)),
                pl.BlockSpec(prm['w_exp'].shape, lambda n: (0, 0)),
                pl.BlockSpec(prm['b_exp'].shape, lambda n: (0, 0)),
                pl.BlockSpec(prm['w_dw'].shape, lambda n: (0, 0)),
                pl.BlockSpec(prm['b_dw'].shape, lambda n: (0, 0)),
            ],
            out_specs=(
                pl.BlockSpec((1, M, Cexp), lambda n: (n, 0, 0)),
                pl.BlockSpec((1, 1, Cexp), lambda n: (n, 0, 0)),
            ),
            scratch_shapes=[pltpu.VMEM((HS, WS, Cexp), jnp.float32)],
        ),
        compiler_params=pltpu.CompilerParams(
            dimension_semantics=("parallel",)),
        cost_estimate=pl.CostEstimate(flops=flops, transcendentals=0,
                                      bytes_accessed=bytes_acc),
    )(x3, prm['w_exp'], prm['b_exp'], prm['w_dw'], prm['b_dw'])
    return dw, pool, Ho, Wo


# ---------------------------------------------------------------------------
# Kernel 2: SE gate (pool -> FC -> ReLU -> FC -> sigmoid) fused with the 1x1
#           projection matmul + BN bias (+ residual).  Grid = (batch, row-tiles).
# ---------------------------------------------------------------------------
def _se_proj_kernel(dw_ref, pool_ref, wr_ref, br_ref, we_ref, be_ref,
                    wp_ref, bp_ref, *rest, inv_hw, with_res):
    if with_res:
        res_ref, o_ref = rest
    else:
        (o_ref,) = rest

    # SE gate (tiny matmuls, bf16 operands, f32 accumulation)
    pooled = pool_ref[0] * inv_hw                                   # (1, Cexp)
    h = jnp.dot(pooled.astype(jnp.bfloat16), wr_ref[...],
                preferred_element_type=jnp.float32) + br_ref[...]
    h = jnp.maximum(h, 0.0)
    g = jnp.dot(h.astype(jnp.bfloat16), we_ref[...],
                preferred_element_type=jnp.float32) + be_ref[...]
    g = jax.nn.sigmoid(g)                                           # (1, Cexp)

    # Gate multiply fused straight into the projection matmul
    gated = (dw_ref[0] * g).astype(jnp.bfloat16)                    # (TM, Cexp)
    y = jnp.dot(gated, wp_ref[...],
                preferred_element_type=jnp.float32) + bp_ref[...]   # (TM, Cout)
    if with_res:
        y = y + res_ref[0]
    o_ref[0] = y


def _se_proj(dw, pool, prm, residual, inv_hw):
    N, M, Cexp = dw.shape
    Cout_p = prm['w_proj'].shape[1]
    TM = _pick_row_tile(M)
    with_res = residual is not None

    kern = functools.partial(_se_proj_kernel, inv_hw=inv_hw, with_res=with_res)

    in_specs = [
        pl.BlockSpec((1, TM, Cexp), lambda n, m: (n, m, 0)),
        pl.BlockSpec((1, 1, Cexp), lambda n, m: (n, 0, 0)),
        pl.BlockSpec(prm['w_se_r'].shape, lambda n, m: (0, 0)),
        pl.BlockSpec(prm['b_se_r'].shape, lambda n, m: (0, 0)),
        pl.BlockSpec(prm['w_se_e'].shape, lambda n, m: (0, 0)),
        pl.BlockSpec(prm['b_se_e'].shape, lambda n, m: (0, 0)),
        pl.BlockSpec(prm['w_proj'].shape, lambda n, m: (0, 0)),
        pl.BlockSpec(prm['b_proj'].shape, lambda n, m: (0, 0)),
    ]
    args = [dw, pool, prm['w_se_r'], prm['b_se_r'], prm['w_se_e'],
            prm['b_se_e'], prm['w_proj'], prm['b_proj']]
    if with_res:
        in_specs.append(pl.BlockSpec((1, TM, Cout_p), lambda n, m: (n, m, 0)))
        args.append(residual)

    flops = int(2 * N * M * Cexp * Cout_p)
    bytes_acc = int(4 * N * M * (Cexp + Cout_p) * (2 if with_res else 1))

    return pl.pallas_call(
        kern,
        out_shape=jax.ShapeDtypeStruct((N, M, Cout_p), jnp.float32),
        grid_spec=pltpu.PrefetchScalarGridSpec(
            num_scalar_prefetch=0,
            grid=(N, M // TM),
            in_specs=in_specs,
            out_specs=pl.BlockSpec((1, TM, Cout_p), lambda n, m: (n, m, 0)),
        ),
        compiler_params=pltpu.CompilerParams(
            dimension_semantics=("parallel", "parallel")),
        cost_estimate=pl.CostEstimate(flops=flops, transcendentals=int(N * Cexp),
                                      bytes_accessed=bytes_acc),
    )(*args)


# ---------------------------------------------------------------------------
# Parameters (synthetic, deterministic).  BN scales folded into conv weights,
# channels padded to 128-lane multiples, MXU weights stored in bf16.
# ---------------------------------------------------------------------------
def init_mbconv_params(key, cin, cout, k, expand=_EXPAND, se_ratio=_SE_RATIO):
    cexp = cin * expand
    cse = max(1, int(cexp * se_ratio))
    cexp_p = _round_up(cexp, _LANE)
    cse_p = _round_up(cse, _LANE)
    cout_p = _round_up(cout, _LANE)
    ks = jax.random.split(key, 8)

    def nrm(kk, shape, s=0.1):
        return (s * jax.random.normal(kk, shape)).astype(jnp.float32)

    def pad2(a, rows, cols):
        return jnp.pad(a, ((0, rows - a.shape[0]), (0, cols - a.shape[1])))

    # raw parameters; BN (inference) is an affine scale/bias per channel
    w_exp = nrm(ks[0], (cin, cexp));  s_exp = jnp.ones((cexp,), jnp.float32)
    b_exp = nrm(ks[1], (1, cexp), 0.01)
    w_dw = nrm(ks[2], (k, k, cexp));  s_dw = jnp.ones((cexp,), jnp.float32)
    b_dw = nrm(ks[3], (1, cexp), 0.01)
    w_se_r = nrm(ks[4], (cexp, cse)); b_se_r = jnp.zeros((1, cse), jnp.float32)
    w_se_e = nrm(ks[5], (cse, cexp)); b_se_e = jnp.zeros((1, cexp), jnp.float32)
    w_proj = nrm(ks[6], (cexp, cout)); s_proj = jnp.ones((cout,), jnp.float32)
    b_proj = nrm(ks[7], (1, cout), 0.01)

    # fold BN scales into the conv weights (kernels then do dot/acc + bias only)
    w_exp = w_exp * s_exp[None, :]
    w_dw = (w_dw * s_dw[None, None, :]).reshape(k * k, cexp)
    w_proj = w_proj * s_proj[None, :]

    return dict(
        k=k, cout=cout,
        w_exp=pad2(w_exp, cin, cexp_p).astype(jnp.bfloat16),
        b_exp=pad2(b_exp, 1, cexp_p),
        w_dw=pad2(w_dw, k * k, cexp_p),          # depthwise stays f32 (VPU path)
        b_dw=pad2(b_dw, 1, cexp_p),
        w_se_r=pad2(w_se_r, cexp_p, cse_p).astype(jnp.bfloat16),
        b_se_r=pad2(b_se_r, 1, cse_p),
        w_se_e=pad2(w_se_e, cse_p, cexp_p).astype(jnp.bfloat16),
        b_se_e=pad2(b_se_e, 1, cexp_p),
        w_proj=pad2(w_proj, cexp_p, cout_p).astype(jnp.bfloat16),
        b_proj=pad2(b_proj, 1, cout_p),
    )


def mbconv_forward(x, prm, stride):
    """x: (N, H, W, Cin) f32 -> (N, ceil(H/stride), ceil(W/stride), Cout)."""
    n, h, w, cin = x.shape
    cout = prm['cout']
    cout_p = prm['w_proj'].shape[1]

    x3 = x.reshape(n, h * w, cin)
    dw, pool, ho, wo = _expand_dw_pool(x3, prm, h, w, stride)

    residual = None
    if stride == 1 and cin == cout:
        # residual presented in the lane-padded channel layout (pad lanes = 0)
        residual = jnp.pad(x3, ((0, 0), (0, 0), (0, cout_p - cin)))

    out = _se_proj(dw, pool, prm, residual, inv_hw=1.0 / float(ho * wo))
    return out.reshape(n, ho, wo, cout_p)[..., :cout]


class MixOPsPallas:
    """Pallas equivalent of generator.SuperNet.MixOPs (inference semantics)."""

    def __init__(self, max_in_channels, max_out_channels, stride, affine=True,
                 to_dispatch=False, init_op_index=None, key=None):
        del affine  # BN folded into conv weights / bias (inference semantics)
        self.stride = stride
        key = jax.random.PRNGKey(0) if key is None else key
        prims = [PRIMITIVES[init_op_index]] if to_dispatch else PRIMITIVES
        keys = jax.random.split(key, len(prims))
        self.ops = [init_mbconv_params(kk, max_in_channels, max_out_channels,
                                       _KSIZE[p]) for kk, p in zip(keys, prims)]

    def __call__(self, x, op_index=0, in_channels=None, out_channels=None,
                 kernel_size=None):
        # TODO(synk): OFA-style elastic width / kernel slicing (in_channels /
        # out_channels / kernel_size) not implemented; None => max config.
        return mbconv_forward(x, self.ops[op_index], self.stride)


if __name__ == "__main__":
    key = jax.random.PRNGKey(0)
    kx, kp = jax.random.split(key)

    N, Cin, H, W = 2, 8, 8, 8            # small shapes consistent with a cell
    Cout, stride = 8, 1

    x_nchw = jax.random.normal(kx, (N, Cin, H, W), jnp.float32)   # PyTorch layout
    x_nhwc = jnp.transpose(x_nchw, (0, 2, 3, 1))                  # kernel layout

    mix = MixOPsPallas(Cin, Cout, stride, affine=True, key=kp)

    y0 = jax.block_until_ready(mix(x_nhwc, op_index=0))   # MB6_3x3_se0.25
    y1 = jax.block_until_ready(mix(x_nhwc, op_index=1))   # MB6_5x5_se0.25

    assert y0.shape == (N, H // stride, W // stride, Cout)
    assert y1.shape == (N, H // stride, W // stride, Cout)
    assert jnp.all(jnp.isfinite(y0)) and jnp.all(jnp.isfinite(y1))
    print("KERNEL_OK")
</pallas_src>

<mosaic_0001>
module attributes {stable_mosaic.version = 11 : i64} {
  func.func @_expand_dw_pool_kernel(%arg0: i32, %arg1: memref<1x64x8xf32, #tpu.memory_space<vmem>>, %arg2: memref<8x128xbf16, #tpu.memory_space<vmem>>, %arg3: memref<1x128xf32, #tpu.memory_space<vmem>>, %arg4: memref<9x128xf32, #tpu.memory_space<vmem>>, %arg5: memref<1x128xf32, #tpu.memory_space<vmem>>, %arg6: memref<1x64x128xf32, #tpu.memory_space<vmem>>, %arg7: memref<1x1x128xf32, #tpu.memory_space<vmem>>, %arg8: memref<10x24x128xf32, #tpu.memory_space<vmem>>) attributes {dimension_semantics = [#tpu.dimension_semantics<parallel>], iteration_bounds = array<i64: 2>, scalar_prefetch = 0 : i64, scratch_operands = 1 : i64, tpu.core_type = #tpu.core_type<tc>, window_params = [{transform_indices = @transform_0, window_bounds = array<i64: 1, 64, 8>}, {pipeline_mode = #tpu.pipeline_mode<synchronous>, transform_indices = @transform_1, window_bounds = array<i64: 8, 128>}, {pipeline_mode = #tpu.pipeline_mode<synchronous>, transform_indices = @transform_2, window_bounds = array<i64: 1, 128>}, {pipeline_mode = #tpu.pipeline_mode<synchronous>, transform_indices = @transform_3, window_bounds = array<i64: 9, 128>}, {pipeline_mode = #tpu.pipeline_mode<synchronous>, transform_indices = @transform_4, window_bounds = array<i64: 1, 128>}, {transform_indices = @transform_5, window_bounds = array<i64: 1, 64, 128>}, {transform_indices = @transform_6, window_bounds = array<i64: 1, 1, 128>}]} {
    %c0 = arith.constant 0 : index
    %c0_0 = arith.constant 0 : index
    %c0_1 = arith.constant 0 : index
    %0 = vector.load %arg1[%c0, %c0_0, %c0_1] : memref<1x64x8xf32, #tpu.memory_space<vmem>>, vector<1x64x8xf32>
    %1 = vector.shape_cast %0 : vector<1x64x8xf32> to vector<64x8xf32>
    %2 = arith.truncf %1 : vector<64x8xf32> to vector<64x8xbf16>
    %c0_2 = arith.constant 0 : index
    %c0_3 = arith.constant 0 : index
    %3 = vector.load %arg2[%c0_2, %c0_3] : memref<8x128xbf16, #tpu.memory_space<vmem>>, vector<8x128xbf16>
    %cst = arith.constant dense<0.000000e+00> : vector<64x128xf32>
    %4 = tpu.matmul %2, %3, %cst {dimension_numbers = #tpu.dot_dimension_numbers<[1], [0], [0], [1], [0, 0, 1, 1], [], []>} : vector<64x8xbf16>, vector<8x128xbf16>, vector<64x128xf32> -> vector<64x128xf32>
    %c0_4 = arith.constant 0 : index
    %c0_5 = arith.constant 0 : index
    %5 = vector.load %arg3[%c0_4, %c0_5] : memref<1x128xf32, #tpu.memory_space<vmem>>, vector<1x128xf32>
    %6 = vector.broadcast %5 : vector<1x128xf32> to vector<64x128xf32>
    %7 = arith.addf %4, %6 : vector<64x128xf32>
    %cst_6 = arith.constant 0.000000e+00 : f32
    %8 = vector.broadcast %cst_6 : f32 to vector<64x128xf32>
    %9 = arith.maximumf %7, %8 : vector<64x128xf32>
    %cst_7 = arith.constant 0.000000e+00 : f32
    %10 = vector.broadcast %cst_7 : f32 to vector<10x24x128xf32>
    %c0_8 = arith.constant 0 : index
    %c0_9 = arith.constant 0 : index
    %c0_10 = arith.constant 0 : index
    %11 = vector.load %arg8[%c0_8, %c0_9, %c0_10] : memref<10x24x128xf32, #tpu.memory_space<vmem>>, vector<10x24x128xf32>
    tpu.vector_store %arg8[%c0_8, %c0_9, %c0_10], %10 {strides = array<i32>} : memref<10x24x128xf32, #tpu.memory_space<vmem>>, vector<10x24x128xf32>,
    %12 = vector.shape_cast %9 : vector<64x128xf32> to vector<8x8x128xf32>
    %c1 = arith.constant 1 : index
    %c8 = arith.constant 8 : index
    %c0_11 = arith.constant 0 : index
    %13 = vector.load %arg8[%c1, %c8, %c0_11] : memref<10x24x128xf32, #tpu.memory_space<vmem>>, vector<8x8x128xf32>
    tpu.vector_store %arg8[%c1, %c8, %c0_11], %12 {strides = array<i32>} : memref<10x24x128xf32, #tpu.memory_space<vmem>>, vector<8x8x128xf32>,
    %cst_12 = arith.constant 0.000000e+00 : f32
    %14 = vector.broadcast %cst_12 : f32 to vector<8x8x128xf32>
    %c0_13 = arith.constant 0 : index
    %c7 = arith.constant 7 : index
    %c0_14 = arith.constant 0 : index
    %15 = vector.load %arg8[%c0_13, %c7, %c0_14] : memref<10x24x128xf32, #tpu.memory_space<vmem>>, vector<8x8x128xf32>
    %c0_15 = arith.constant 0 : index
    %c0_16 = arith.constant 0 : index
    %16 = vector.load %arg4[%c0_15, %c0_16] : memref<9x128xf32, #tpu.memory_space<vmem>>, vector<1x128xf32>
    %17 = vector.shape_cast %16 : vector<1x128xf32> to vector<1x1x128xf32>
    %18 = vector.broadcast %17 : vector<1x1x128xf32> to vector<8x8x128xf32>
    %19 = arith.mulf %15, %18 : vector<8x8x128xf32>
    %20 = arith.addf %14, %19 : vector<8x8x128xf32>
    %c0_17 = arith.constant 0 : index
    %c8_18 = arith.constant 8 : index
    %c0_19 = arith.constant 0 : index
    %21 = vector.load %arg8[%c0_17, %c8_18, %c0_19] : memref<10x24x128xf32, #tpu.memory_space<vmem>>, vector<8x8x128xf32>
    %c1_20 = arith.constant 1 : index
    %c0_21 = arith.constant 0 : index
    %22 = vector.load %arg4[%c1_20, %c0_21] : memref<9x128xf32, #tpu.memory_space<vmem>>, vector<1x128xf32>
    %23 = vector.shape_cast %22 : vector<1x128xf32> to vector<1x1x128xf32>
    %24 = vector.broadcast %23 : vector<1x1x128xf32> to vector<8x8x128xf32>
    %25 = arith.mulf %21, %24 : vector<8x8x128xf32>
    %26 = arith.addf %20, %25 : vector<8x8x128xf32>
    %c0_22 = arith.constant 0 : index
    %c9 = arith.constant 9 : index
    %c0_23 = arith.constant 0 : index
    %27 = vector.load %arg8[%c0_22, %c9, %c0_23] : memref<10x24x128xf32, #tpu.memory_space<vmem>>, vector<8x8x128xf32>
    %c2 = arith.constant 2 : index
    %c0_24 = arith.constant 0 : index
    %28 = vector.load %arg4[%c2, %c0_24] : memref<9x128xf32, #tpu.memory_space<vmem>>, vector<1x128xf32>
    %29 = vector.shape_cast %28 : vector<1x128xf32> to vector<1x1x128xf32>
    %30 = vector.broadcast %29 : vector<1x1x128xf32> to vector<8x8x128xf32>
    %31 = arith.mulf %27, %30 : vector<8x8x128xf32>
    %32 = arith.addf %26, %31 : vector<8x8x128xf32>
    %c1_25 = arith.constant 1 : index
    %c7_26 = arith.constant 7 : index
    %c0_27 = arith.constant 0 : index
    %33 = vector.load %arg8[%c1_25, %c7_26, %c0_27] : memref<10x24x128xf32, #tpu.memory_space<vmem>>, vector<8x8x128xf32>
    %c3 = arith.constant 3 : index
    %c0_28 = arith.constant 0 : index
    %34 = vector.load %arg4[%c3, %c0_28] : memref<9x128xf32, #tpu.memory_space<vmem>>, vector<1x128xf32>
    %35 = vector.shape_cast %34 : vector<1x128xf32> to vector<1x1x128xf32>
    %36 = vector.broadcast %35 : vector<1x1x128xf32> to vector<8x8x128xf32>
    %37 = arith.mulf %33, %36 : vector<8x8x128xf32>
    %38 = arith.addf %32, %37 : vector<8x8x128xf32>
    %c1_29 = arith.constant 1 : index
    %c8_30 = arith.constant 8 : index
    %c0_31 = arith.constant 0 : index
    %39 = vector.load %arg8[%c1_29, %c8_30, %c0_31] : memref<10x24x128xf32, #tpu.memory_space<vmem>>, vector<8x8x128xf32>
    %c4 = arith.constant 4 : index
    %c0_32 = arith.constant 0 : index
    %40 = vector.load %arg4[%c4, %c0_32] : memref<9x128xf32, #tpu.memory_space<vmem>>, vector<1x128xf32>
    %41 = vector.shape_cast %40 : vector<1x128xf32> to vector<1x1x128xf32>
    %42 = vector.broadcast %41 : vector<1x1x128xf32> to vector<8x8x128xf32>
    %43 = arith.mulf %39, %42 : vector<8x8x128xf32>
    %44 = arith.addf %38, %43 : vector<8x8x128xf32>
    %c1_33 = arith.constant 1 : index
    %c9_34 = arith.constant 9 : index
    %c0_35 = arith.constant 0 : index
    %45 = vector.load %arg8[%c1_33, %c9_34, %c0_35] : memref<10x24x128xf32, #tpu.memory_space<vmem>>, vector<8x8x128xf32>
    %c5 = arith.constant 5 : index
    %c0_36 = arith.constant 0 : index
    %46 = vector.load %arg4[%c5, %c0_36] : memref<9x128xf32, #tpu.memory_space<vmem>>, vector<1x128xf32>
    %47 = vector.shape_cast %46 : vector<1x128xf32> to vector<1x1x128xf32>
    %48 = vector.broadcast %47 : vector<1x1x128xf32> to vector<8x8x128xf32>
    %49 = arith.mulf %45, %48 : vector<8x8x128xf32>
    %50 = arith.addf %44, %49 : vector<8x8x128xf32>
    %c2_37 = arith.constant 2 : index
    %c7_38 = arith.constant 7 : index
    %c0_39 = arith.constant 0 : index
    %51 = vector.load %arg8[%c2_37, %c7_38, %c0_39] : memref<10x24x128xf32, #tpu.memory_space<vmem>>, vector<8x8x128xf32>
    %c6 = arith.constant 6 : index
    %c0_40 = arith.constant 0 : index
    %52 = vector.load %arg4[%c6, %c0_40] : memref<9x128xf32, #tpu.memory_space<vmem>>, vector<1x128xf32>
    %53 = vector.shape_cast %52 : vector<1x128xf32> to vector<1x1x128xf32>
    %54 = vector.broadcast %53 : vector<1x1x128xf32> to vector<8x8x128xf32>
    %55 = arith.mulf %51, %54 : vector<8x8x128xf32>
    %56 = arith.addf %50, %55 : vector<8x8x128xf32>
    %c2_41 = arith.constant 2 : index
    %c8_42 = arith.constant 8 : index
    %c0_43 = arith.constant 0 : index
    %57 = vector.load %arg8[%c2_41, %c8_42, %c0_43] : memref<10x24x128xf32, #tpu.memory_space<vmem>>, vector<8x8x128xf32>
    %c7_44 = arith.constant 7 : index
    %c0_45 = arith.constant 0 : index
    %58 = vector.load %arg4[%c7_44, %c0_45] : memref<9x128xf32, #tpu.memory_space<vmem>>, vector<1x128xf32>
    %59 = vector.shape_cast %58 : vector<1x128xf32> to vector<1x1x128xf32>
    %60 = vector.broadcast %59 : vector<1x1x128xf32> to vector<8x8x128xf32>
    %61 = arith.mulf %57, %60 : vector<8x8x128xf32>
    %62 = arith.addf %56, %61 : vector<8x8x128xf32>
    %c2_46 = arith.constant 2 : index
    %c9_47 = arith.constant 9 : index
    %c0_48 = arith.constant 0 : index
    %63 = vector.load %arg8[%c2_46, %c9_47, %c0_48] : memref<10x24x128xf32, #tpu.memory_space<vmem>>, vector<8x8x128xf32>
    %c8_49 = arith.constant 8 : index
    %c0_50 = arith.constant 0 : index
    %64 = vector.load %arg4[%c8_49, %c0_50] : memref<9x128xf32, #tpu.memory_space<vmem>>, vector<1x128xf32>
    %65 = vector.shape_cast %64 : vector<1x128xf32> to vector<1x1x128xf32>
    %66 = vector.broadcast %65 : vector<1x1x128xf32> to vector<8x8x128xf32>
    %67 = arith.mulf %63, %66 : vector<8x8x128xf32>
    %68 = arith.addf %62, %67 : vector<8x8x128xf32>
    %c0_51 = arith.constant 0 : index
    %c0_52 = arith.constant 0 : index
    %69 = vector.load %arg5[%c0_51, %c0_52] : memref<1x128xf32, #tpu.memory_space<vmem>>, vector<1x128xf32>
    %70 = vector.shape_cast %69 : vector<1x128xf32> to vector<1x1x128xf32>
    %71 = vector.broadcast %70 : vector<1x1x128xf32> to vector<8x8x128xf32>
    %72 = arith.addf %68, %71 : vector<8x8x128xf32>
    %cst_53 = arith.constant 0.000000e+00 : f32
    %73 = vector.broadcast %cst_53 : f32 to vector<8x8x128xf32>
    %74 = arith.maximumf %72, %73 : vector<8x8x128xf32>
    %75 = vector.shape_cast %74 : vector<8x8x128xf32> to vector<64x128xf32>
    %c0_54 = arith.constant 0 : index
    %c0_55 = arith.constant 0 : index
    %c0_56 = arith.constant 0 : index
    %76 = vector.load %arg6[%c0_54, %c0_55, %c0_56] : memref<1x64x128xf32, #tpu.memory_space<vmem>>, vector<1x64x128xf32>
    %77 = vector.shape_cast %76 : vector<1x64x128xf32> to vector<64x128xf32>
    %78 = vector.shape_cast %75 : vector<64x128xf32> to vector<1x64x128xf32>
    tpu.vector_store %arg6[%c0_54, %c0_55, %c0_56], %78 {strides = array<i32>} : memref<1x64x128xf32, #tpu.memory_space<vmem>>, vector<1x64x128xf32>,
    %cst_57 = arith.constant dense<0.000000e+00> : vector<128xf32>
    %79 = vector.multi_reduction <add>, %74, %cst_57 [0, 1] : vector<8x8x128xf32> to vector<128xf32>
    %80 = vector.shape_cast %79 : vector<128xf32> to vector<1x1x128xf32>
    %c0_58 = arith.constant 0 : index
    %c0_59 = arith.constant 0 : index
    %c0_60 = arith.constant 0 : index
    %81 = vector.load %arg7[%c0_58, %c0_59, %c0_60] : memref<1x1x128xf32, #tpu.memory_space<vmem>>, vector<1x1x128xf32>
    tpu.vector_store %arg7[%c0_58, %c0_59, %c0_60], %80 {strides = array<i32>} : memref<1x1x128xf32, #tpu.memory_space<vmem>>, vector<1x1x128xf32>,
    return
  }
  func.func @transform_0(%arg0: i32) -> (i32, i32, i32) {
    %c0_i32 = arith.constant 0 : i32
    %c0_i32_0 = arith.constant 0 : i32
    %c0_i32_1 = arith.constant 0 : i32
    return %arg0, %c0_i32, %c0_i32_0 : i32, i32, i32
  }
  func.func @transform_1(%arg0: i32) -> (i32, i32) {
    %c0_i32 = arith.constant 0 : i32
    %c0_i32_0 = arith.constant 0 : i32
    %c0_i32_1 = arith.constant 0 : i32
    return %c0_i32, %c0_i32_0 : i32, i32
  }
  func.func @transform_2(%arg0: i32) -> (i32, i32) {
    %c0_i32 = arith.constant 0 : i32
    %c0_i32_0 = arith.constant 0 : i32
    %c0_i32_1 = arith.constant 0 : i32
    return %c0_i32, %c0_i32_0 : i32, i32
  }
  func.func @transform_3(%arg0: i32) -> (i32, i32) {
    %c0_i32 = arith.constant 0 : i32
    %c0_i32_0 = arith.constant 0 : i32
    %c0_i32_1 = arith.constant 0 : i32
    return %c0_i32, %c0_i32_0 : i32, i32
  }
  func.func @transform_4(%arg0: i32) -> (i32, i32) {
    %c0_i32 = arith.constant 0 : i32
    %c0_i32_0 = arith.constant 0 : i32
    %c0_i32_1 = arith.constant 0 : i32
    return %c0_i32, %c0_i32_0 : i32, i32
  }
  func.func @transform_5(%arg0: i32) -> (i32, i32, i32) {
    %c0_i32 = arith.constant 0 : i32
    %c0_i32_0 = arith.constant 0 : i32
    %c0_i32_1 = arith.constant 0 : i32
    return %arg0, %c0_i32, %c0_i32_0 : i32, i32, i32
  }
  func.func @transform_6(%arg0: i32) -> (i32, i32, i32) {
    %c0_i32 = arith.constant 0 : i32
    %c0_i32_0 = arith.constant 0 : i32
    %c0_i32_1 = arith.constant 0 : i32
    return %arg0, %c0_i32, %c0_i32_0 : i32, i32, i32
  }
}

</mosaic_0001>

<bundles_post_ra>
// kernel: tpu_custom_call.1
= control target key start
LH: loop header
LB: loop body
LE: loop exit
PB: predicated region body
PF: predicated region fallthrough
CT: control target
= control target key end

     0   :  { %12 = vsyncpa [#allocation4], 0  ;;  %s1300_s0 = inlined_call_operand.vmem [shape: f32[2,64,8], index: 0, kind: input, shape index: {}]   ;;  %s1301_s1 = inlined_call_operand.vmem [shape: bf16[8,128], index: 1, kind: input, shape index: {}]   ;;  %s1302_s2 = inlined_call_operand.vmem [shape: f32[1,128], index: 2, kind: input, shape index: {}]   ;;  %s1303_s3 = inlined_call_operand.vmem [shape: f32[9,128], index: 3, kind: input, shape index: {}]   ;;  %s1304_s4 = inlined_call_operand.vmem [shape: f32[1,128], index: 4, kind: input, shape index: {}]   ;;  %s1305_s5 = inlined_call_operand.hbm [shape: f32[2,64,128], index: 5, kind: output, shape index: {0}]   ;;  %s1306_s6 = inlined_call_operand.hbm [shape: f32[2,1,128], index: 6, kind: output, shape index: {1}]  }
   0x1   :  { %14 = vsyncpa [#allocation4 + $0x1], 0 }
   0x2   :  { %15 = vsyncpa [#allocation6], 0 }
   0x3   :  { %17 = vsyncpa [#allocation6 + $0x1], 0  ;;  %s984_s21 = smov 0   ;;  %s986_s22 = smov 0  }
   0x4   :  { %s988_s23 = smov 0   ;;  %s990_s24 = smov 0  }
   0x5 LB: > { %s1005_s25 = sadd.s32 4294967295, %s944_s24   ;;  %s771_s26 = sadd.s32 4294967294, %s944_s24   ;;  %s944_s24 = sphi %s990_s24, %s1312_s24   ;;  %s940_s23 = sphi %s988_s23, %s1311_s23   ;;  %s936_s22 = sphi %s986_s22, %s1310_s22   ;;  %s932_s21 = sphi %s984_s21, %s1309_s21  }
   0x6   : > { %s1009_s27 = sadd.s32 1, %s944_s24   ;;  %s140_s28 = sadd.s32 1, %s940_s23 }
   0x7   : > { %s137_s29 = ssub.s32 %s944_s24, %s1009_s27  ;;  %p150_p0 = scmp.ne.s32.totalorder %s940_s23, %s936_s22 }
   0x8   : > { %p138_p1 = scmp.eq.s32.totalorder %s137_s29, 0  ;;  %p151_p2 = scmp.eq.s32.totalorder %s1005_s25, 1 }
   0x9   : > { %p156_p3 = scmp.ne.s32.totalorder %s936_s22, %s932_s21  ;;  %p157_p4 = scmp.eq.s32.totalorder %s771_s26, 1 }
   0xa   : > { %s1020_s30 = scalar_select %p138_p1, %s940_s23, %s140_s28  }
   0xb   : > { %p1022_p5 = por %p151_p2, %p150_p0  ;;  %p1026_p6 = por %p157_p4, %p156_p3 }
   0xc   : > { %p774_p7 = scmp.ge.s32.totalorder %s944_s24, 1  ;;  %p221_p8 = scmp.lt.s32.totalorder %s944_s24, 3 }
   0xe   : > { %p222_p9 = pnand %p774_p7, %p221_p8 }
   0xf   : > { %p255_p10 = scmp.lt.s32.totalorder (!%p222_p9), %s1005_s25, 1  ;;  %s1167_s26 = sand.u32 (!%p222_p9), 1, %s936_s22  }
  0x10   : > { %225 = sbr.rel (%p222_p9) target bundleno = 231 (0xe7), region = 40  ;;  %s775_s9 = sshll.u32 (!%p222_p9), %s1167_s26, 6 }
  0x11   : > { %s1204_s10 = scalar_lea.vmem (!%p222_p9), [#allocation3], %s775_s9  ;;  %s649_s17 = scalar_lea.sflag (!%p222_p9), [#allocation4], %s1167_s26 }
  0x12   : > { %s870_s29 = scalar_lea.hbm (!%p222_p9), %s1305_s5, 128 }
  0x15   : > { %v273_v0 = vld [vmem:[%s1301_s1] sm:$0xf]  ;;  %vm291_vm0 = vcmask 1043456   ;;  %s256_s11 = scalar_select %p255_p10, %s1005_s25, 1  ;;  %vm278_vm1 = vcmask 64512   ;;  %v946_v14 = vmov 0.0  }
  0x16   : > { %v293_v1 = vsel %vm291_vm0, %v273_v0, 0  ;;  %332 = vst [vmem:[#allocation2] sm:$0xff] %v946_v14  ;;  %v1043_v15 = vld [vmem:[%s1302_s2] ss:$0 sm:$0xff]  ;;  %v1054_v20 = vld [vmem:[%s1303_s3 + $0x1] ss:$0 sm:$0xff] }
  0x17   : > { %302 = vmatpush.bf16.msra.mxu0 %v293_v1  ;;  %789 = vmatpush.bf16.msra.mxu1 %v293_v1  ;;  %s787_s12 = sshll.u32 %s256_s11, 6  ;;  %333 = vst [vmem:[#allocation2 + $0x8] sm:$0xff] %v946_v14  ;;  %v1048_v16 = vld [vmem:[%s1303_s3] ss:$0 sm:$0xff]  ;;  %v407_v25 = vmul.f32 0.0, %v1054_v20  ;;  %s788_s11 = sshll.u32 %s1005_s25, 6 }
  0x18   : > { %790 = vmatpush.bf16.msra.mxu2 %v293_v1  ;;  %791 = vmatpush.bf16.msra.mxu3 %v293_v1  ;;  %s259_s15 = scalar_lea.vmem %s1300_s0, %s787_s12  ;;  %334 = vst [vmem:[#allocation2 + $0x10] sm:$0xff] %v946_v14  ;;  %v1062_v26 = vld [vmem:[%s1303_s3 + $0x2] ss:$0 sm:$0xff]  ;;  %v1069_v35 = vld [vmem:[%s1303_s3 + $0x3] ss:$0 sm:$0xff]  ;;  %s664_s14 = scalar_lea.hbm %s1305_s5, %s788_s11 }
  0x19   : > { %v261_v2 = vld [vmem:[%s259_s15] sm:$0xff]  ;;  %v262_v3 = vld [vmem:[%s259_s15 + $0x8] sm:$0xff]  ;;  %v263_v4 = vld [vmem:[%s259_s15 + $0x10] sm:$0xff]  ;;  %335 = vst [vmem:[#allocation2 + $0x18] sm:$0xff] %v946_v14  ;;  %s667_s16 = sshll.u32 %s664_s14, 4  ;;  %s668_s16 = int_to_ptr.hbm [resolvable:$true] %s667_s16 }
  0x1a   : > { %v269_v5 = vpack.c.bf16 %v262_v3, %v261_v2  ;;  %v264_v6 = vld [vmem:[%s259_s15 + $0x18] sm:$0xff]  ;;  %v265_v7 = vld [vmem:[%s259_s15 + $0x20] sm:$0xff]  ;;  %v266_v8 = vld [vmem:[%s259_s15 + $0x28] sm:$0xff]  ;;  %337 = vst [vmem:[#allocation2 + $0x28] sm:$0xff] %v946_v14  ;;  %s864_s18 = sshra.s32 %s668_s16, 4  ;;  %s865_s18 = int_to_ptr.hbm [resolvable:$true] %s864_s18 }
  0x1b   : > { %v270_v9 = vpack.c.bf16 %v264_v6, %v263_v4  ;;  %v271_v10 = vpack.c.bf16 %v266_v8, %v265_v7  ;;  %v267_v11 = vld [vmem:[%s259_s15 + $0x30] sm:$0xff]  ;;  %v268_v12 = vld [vmem:[%s259_s15 + $0x38] sm:$0xff]  ;;  %338 = vst [vmem:[#allocation2 + $0x30] sm:$0xff] %v946_v14  ;;  %v1083_v48 = vld [vmem:[%s1303_s3 + $0x4] ss:$0 sm:$0xff]  ;;  %s665_s15 = sshll.u32 %s1204_s10, 4  ;;  %p871_p0 = scmp.lt.s32.totalorder %s865_s18, %s1305_s5  ;;  %s666_s15 = int_to_ptr.vmem [resolvable:$true] %s665_s15 }
  0x1c   : > { %778 = vmatmul.msk.bf16.vlgmr.msra.gmra.mxu0 %vm278_vm1, %v269_v5  ;;  %v272_v13 = vpack.c.bf16 %v268_v12, %v267_v11  ;;  %340 = vst [vmem:[#allocation2 + $0x40] sm:$0xff] %v946_v14  ;;  %v1088_v50 = vld [vmem:[%s1303_s3 + $0x7] ss:$0 sm:$0xff]  ;;  %v1096_v54 = vld [vmem:[%s1303_s3 + $0x5] ss:$0 sm:$0xff]  ;;  %s866_s19 = scalar_lea.hbm %s865_s18, 64 }
  0x1d   : > { %779 = vmatmul.msk.bf16.vlgmr.msra.gmra.mxu1 %vm278_vm1, %v270_v9  ;;  %780 = vmatmul.msk.bf16.vlgmr.msra.gmra.mxu2 %vm278_vm1, %v271_v10  ;;  %341 = vst [vmem:[#allocation2 + $0x48] sm:$0xff] %v946_v14  ;;  %v1103_v58 = vld [vmem:[%s1303_s3 + $0x6] ss:$0 sm:$0xff]  ;;  %v1108_v59 = vld [vmem:[%s1303_s3 + $0x8] ss:$0 sm:$0xff]  ;;  %p867_p11 = scmp.ne.s32.totalorder %s865_s18, %s866_s19  ;;  %p872_p1 = scmp.lt.s32.totalorder %s870_s29, %s866_s19 }
  0x1e   : > { %781 = vmatmul.msk.bf16.vlgmr.msra.gmra.mxu3 %vm278_vm1, %v272_v13  ;;  %343 = vst [vmem:[#allocation2 + $0x58] sm:$0xff] %v946_v14  ;;  %v371_v18 = vld [vmem:[#allocation2 + $0x7] sm:$0xff] }
  0x1f   : > { %344 = vst [vmem:[#allocation2 + $0x60] sm:$0xff] %v946_v14  ;;  %v381_v24 = vmul.f32 %v1048_v16, %v371_v18  ;;  %v423_v27 = vld [vmem:[#allocation2 + $0x9] sm:$0xff]  ;;  %p868_p12 = pnand %p867_p11, %p1022_p5  ;;  %p873_p2 = por %p872_p1, %p871_p0 }
  0x20   : > { %346 = vst [vmem:[#allocation2 + $0x70] sm:$0xff] %v946_v14  ;;  %v433_v30 = vmul.f32 %v1062_v26, %v423_v27 }
  0x21   : > { %347 = vst [vmem:[#allocation2 + $0x78] sm:$0xff] %v946_v14  ;;  %v415_v29 = vadd.f32 %v407_v25, %v381_v24  ;;  %p869_p13 = pneg %p868_p12 }
  0x22   : > { %349 = vst [vmem:[#allocation2 + $0x88] sm:$0xff] %v946_v14 }
  0x23   : > { %350 = vst [vmem:[#allocation2 + $0x90] sm:$0xff] %v946_v14  ;;  %v441_v41 = vadd.f32 %v433_v30, %v415_v29  ;;  %p874_p3 = pnand %p873_p2, %p869_p13 }
  0x24   : > { %352 = vst [vmem:[#allocation2 + $0xa0] sm:$0xff] %v946_v14 }
  0x25   : > { %353 = vst [vmem:[#allocation2 + $0xa8] sm:$0xff] %v946_v14 }
  0x26   : > { %355 = vst [vmem:[#allocation2 + $0xb8] sm:$0xff] %v946_v14 }
  0x27   : > { %356 = vst [vmem:[#allocation2 + $0xc0] sm:$0xff] %v946_v14 }
  0x28   : > { %358 = vst [vmem:[#allocation2 + $0xd0] sm:$0xff] %v946_v14 }
  0x29   : > { %359 = vst [vmem:[#allocation2 + $0xd8] sm:$0xff] %v946_v14 }
  0x2a   : > { %360 = vst [vmem:[#allocation2 + $0xe0] sm:$0xff] %v946_v14 }
  0x2b   : > { %361 = vst [vmem:[#allocation2 + $0xe8] sm:$0xff] %v946_v14 }
  0x99   : > { %v304_v17 = vpop.f32.mrf.mxu0 }
  0x9a   : > { %v305_v19 = vadd.f32 %v1043_v15, %v304_v17  ;;  %v309_v21 = vpop.f32.mrf.mxu1 }
  0x9b   : > { %v310_v22 = vadd.f32 %v1043_v15, %v309_v21 }
  0x9c   : > { %v324_v23 = vmax.f32 %v305_v19, 0.0 }
  0x9d   : > { %v326_v28 = vmax.f32 %v310_v22, 0.0 }
  0x9e   : > { %363 = vst [vmem:[#allocation2 + $0x20] sm:$0xff] %v324_v23  ;;  %v408_v52 = vmul.f32 %v1054_v20, %v324_v23  ;;  %v485_v61 = vmul.f32 %v1083_v48, %v324_v23 }
  0x9f   : > { %365 = vst [vmem:[#allocation2 + $0x50] sm:$0xff] %v326_v28  ;;  %v410_v57 = vmul.f32 %v1054_v20, %v326_v28  ;;  %v1112_v62 = vmul.f32 %v1083_v48, %v326_v28  ;;  %v1115_v63 = vmul.f32 %v1088_v50, %v326_v28 }
  0xa0   : > { %v314_v31 = vpop.f32.mrf.mxu2 }
  0xa1   : > { %v315_v32 = vadd.f32 %v1043_v15, %v314_v31  ;;  %v319_v33 = vpop.f32.mrf.mxu3  ;;  %v306_v34 = vpop.f32.mrf.mxu0 }
  0xa2   : > { %v320_v36 = vadd.f32 %v1043_v15, %v319_v33  ;;  %v307_v37 = vadd.f32 %v1043_v15, %v306_v34  ;;  %v311_v38 = vpop.f32.mrf.mxu1 }
  0xa3   : > { %v328_v39 = vmax.f32 %v315_v32, 0.0  ;;  %v312_v40 = vadd.f32 %v1043_v15, %v311_v38 }
  0xa4   : > { %v1074_v42 = vmax.f32 %v320_v36, 0.0  ;;  %v325_v43 = vmax.f32 %v307_v37, 0.0 }
  0xa5   : > { %v372_v44 = vld [vmem:[#allocation2 + $0x1f] sm:$0xff]  ;;  %367 = vst [vmem:[#allocation2 + $0x80] sm:$0xff] %v328_v39  ;;  %v1076_v45 = vmax.f32 %v312_v40, 0.0  ;;  %v1119_v2 = vmul.f32 %v1054_v20, %v328_v39  ;;  %v1122_v3 = vmul.f32 %v1083_v48, %v328_v39  ;;  %v1127_v7 = vmul.f32 %v1088_v50, %v328_v39 }
  0xa6   : > { %v382_v46 = vmul.f32 %v1048_v16, %v372_v44  ;;  %v459_v47 = vmul.f32 %v1069_v35, %v372_v44  ;;  %v374_v49 = vld [vmem:[#allocation2 + $0x4f] sm:$0xff]  ;;  %369 = vst [vmem:[#allocation2 + $0xb0] sm:$0xff] %v1074_v42  ;;  %v424_v56 = vld [vmem:[#allocation2 + $0x21] sm:$0xff]  ;;  %v414_v17 = vmul.f32 %v1054_v20, %v1074_v42  ;;  %v1141_v18 = vmul.f32 %v1083_v48, %v1074_v42 }
  0xa7   : > { %v384_v51 = vmul.f32 %v1048_v16, %v374_v49  ;;  %364 = vst [vmem:[#allocation2 + $0x38] sm:$0xff] %v325_v43  ;;  %v426_v55 = vld [vmem:[#allocation2 + $0x51] sm:$0xff]  ;;  %v434_v4 = vmul.f32 %v1062_v26, %v424_v56  ;;  %v511_v6 = vmul.f32 %v1096_v54, %v424_v56  ;;  %v461_v8 = vmul.f32 %v1069_v35, %v374_v49 }
  0xa8   : > { %v467_v53 = vadd.f32 %v459_v47, %v441_v41  ;;  %366 = vst [vmem:[#allocation2 + $0x68] sm:$0xff] %v1076_v45  ;;  %v416_v60 = vadd.f32 %v408_v52, %v382_v46  ;;  %v436_v1 = vmul.f32 %v1062_v26, %v426_v55  ;;  %v1131_v9 = vmul.f32 %v1096_v54, %v426_v55  ;;  %v316_v12 = vpop.f32.mrf.mxu2 }
  0xa9   : > { %v418_v0 = vadd.f32 %v410_v57, %v384_v51  ;;  %v539_v10 = vmul.f32 %v1103_v58, %v374_v49  ;;  %v1135_v11 = vmul.f32 %v1108_v59, %v426_v55  ;;  %v409_v21 = vmul.f32 %v1054_v20, %v325_v43  ;;  %v321_v22 = vpop.f32.mrf.mxu3 }
  0xaa   : > { %v493_v5 = vadd.f32 %v485_v61, %v467_v53  ;;  %v442_v13 = vadd.f32 %v434_v4, %v416_v60  ;;  %v486_v25 = vmul.f32 %v1083_v48, %v325_v43  ;;  %v564_v27 = vmul.f32 %v1088_v50, %v325_v43 }
  0xab   : > { %v444_v23 = vadd.f32 %v436_v1, %v418_v0  ;;  %v411_v29 = vmul.f32 %v1054_v20, %v1076_v45  ;;  %v488_v33 = vmul.f32 %v1083_v48, %v1076_v45  ;;  %v317_v34 = vadd.f32 %v1043_v15, %v316_v12  ;;  %v1173_v1 = vld [vmem:[%s1304_s4] ss:$0 sm:$0xff] }
  0xac   : > { %v376_v14 = vld [vmem:[#allocation2 + $0x7f] sm:$0xff]  ;;  %v519_v30 = vadd.f32 %v511_v6, %v493_v5  ;;  %v322_v40 = vadd.f32 %v1043_v15, %v321_v22 }
  0xad   : > { %v1148_v31 = vld [vmem:[#allocation2 + $0xaf] sm:$0xff]  ;;  %v386_v36 = vmul.f32 %v1048_v16, %v376_v14  ;;  %v463_v41 = vmul.f32 %v1069_v35, %v376_v14  ;;  %v428_v57 = vld [vmem:[#allocation2 + $0x81] sm:$0xff]  ;;  %v329_v12 = vmax.f32 %v317_v34, 0.0 }
  0xae   : > { %v373_v19 = vld [vmem:[#allocation2 + $0x37] sm:$0xff]  ;;  %v388_v47 = vmul.f32 %v1048_v16, %v1148_v31 }
  0xaf   : > { %v425_v24 = vld [vmem:[#allocation2 + $0x39] sm:$0xff]  ;;  %v375_v28 = vld [vmem:[#allocation2 + $0x67] sm:$0xff]  ;;  %v383_v32 = vmul.f32 %v1048_v16, %v373_v19  ;;  %v460_v37 = vmul.f32 %v1069_v35, %v373_v19  ;;  %v538_v38 = vmul.f32 %v1103_v58, %v373_v19  ;;  %v1177_v19 = vld [vmem:[#allocation2 + $0xb1] sm:$0xff]  ;;  %368 = vst [vmem:[#allocation2 + $0x98] sm:$0xff] %v329_v12 }
  0xb0   : > { %v427_v39 = vld [vmem:[#allocation2 + $0x69] sm:$0xff]  ;;  %v435_v44 = vmul.f32 %v1062_v26, %v425_v24  ;;  %v385_v46 = vmul.f32 %v1048_v16, %v375_v28  ;;  %v462_v52 = vmul.f32 %v1069_v35, %v375_v28  ;;  %v512_v55 = vmul.f32 %v1096_v54, %v425_v24 }
  0xb1   : > { %v417_v43 = vadd.f32 %v409_v21, %v383_v32  ;;  %v468_v49 = vadd.f32 %v460_v37, %v442_v13  ;;  %v546_v51 = vadd.f32 %v538_v38, %v519_v30  ;;  %v437_v15 = vmul.f32 %v1062_v26, %v427_v39 }
  0xb2   : > { %v419_v56 = vadd.f32 %v411_v29, %v385_v46  ;;  %v590_v0 = vmul.f32 %v1108_v59, %v425_v24  ;;  %v470_v4 = vadd.f32 %v462_v52, %v444_v23  ;;  %v1175_v13 = vmax.f32 %v322_v40, 0.0 }
  0xb3   : > { %v443_v53 = vadd.f32 %v435_v44, %v417_v43  ;;  %v494_v60 = vadd.f32 %v486_v25, %v468_v49  ;;  %v572_v61 = vadd.f32 %v564_v27, %v546_v51  ;;  %v514_v25 = vmul.f32 %v1096_v54, %v427_v39 }
  0xb4   : > { %v445_v6 = vadd.f32 %v437_v15, %v419_v56  ;;  %v496_v29 = vadd.f32 %v488_v33, %v470_v4  ;;  %v438_v24 = vmul.f32 %v1062_v26, %v428_v57  ;;  %v541_v27 = vmul.f32 %v1103_v58, %v376_v14  ;;  %370 = vst [vmem:[#allocation2 + $0xc8] sm:$0xff] %v1175_v13 }
  0xb5   : > { %v469_v5 = vadd.f32 %v461_v8, %v443_v53  ;;  %v520_v21 = vadd.f32 %v512_v55, %v494_v60  ;;  %v598_v22 = vadd.f32 %v590_v0, %v572_v61  ;;  %v420_v8 = vadd.f32 %v1119_v2, %v386_v36  ;;  %v535_v36 = vld [vmem:[#allocation2 + $0xdf] sm:$0xff] }
  0xb6   : > { %v471_v30 = vadd.f32 %v463_v41, %v445_v6  ;;  %v522_v37 = vadd.f32 %v514_v25, %v496_v29  ;;  %v422_v33 = vadd.f32 %v414_v17, %v388_v47  ;;  %v440_v38 = vmul.f32 %v1062_v26, %v1177_v19  ;;  %v377_v53 = vld [vmem:[#allocation2 + $0x97] sm:$0xff] }
  0xb7   : > { %v495_v23 = vadd.f32 %v1112_v62, %v469_v5  ;;  %v547_v32 = vadd.f32 %v539_v10, %v520_v21  ;;  %v1186_v34 = vadd.f32 %v1173_v1, %v598_v22  ;;  %v540_v14 = vmul.f32 %v1103_v58, %v375_v28  ;;  %v429_v55 = vld [vmem:[#allocation2 + $0x99] sm:$0xff] }
  0xb8   : > { %v549_v2 = vadd.f32 %v541_v27, %v522_v37  ;;  %v497_v10 = vadd.f32 %v1122_v3, %v471_v30  ;;  %v515_v43 = vmul.f32 %v1096_v54, %v428_v57  ;;  %v593_v44 = vmul.f32 %v1108_v59, %v428_v57 }
  0xb9   : > { %v521_v40 = vadd.f32 %v1131_v9, %v495_v23  ;;  %v573_v62 = vadd.f32 %v1115_v63, %v547_v32  ;;  %v618_v41 = vmax.f32 %v1186_v34, 0.0  ;;  %v566_v46 = vmul.f32 %v1088_v50, %v1076_v45 }
  0xba   : > { %v446_v47 = vadd.f32 %v438_v24, %v420_v8  ;;  %v465_v9 = vmul.f32 %v1069_v35, %v1148_v31  ;;  %v575_v28 = vadd.f32 %v1127_v7, %v549_v2  ;;  %v448_v3 = vadd.f32 %v440_v38, %v422_v33 }
  0xbb   : > { %v548_v17 = vadd.f32 %v540_v14, %v521_v40  ;;  %v599_v63 = vadd.f32 %v1135_v11, %v573_v62  ;;  %626 = vst [vmem:[%s1204_s10] sm:$0xff] %v618_v41  ;;  %v592_v51 = vmul.f32 %v1108_v59, %v427_v39  ;;  %v545_v52 = vmul.f32 %v1103_v58, %v535_v36  ;;  %v456_v0 = vld [vmem:[#allocation2 + $0xc7] sm:$0xff] }
  0xbc   : > { %v413_v45 = vmul.f32 %v1054_v20, %v329_v12  ;;  %v490_v56 = vmul.f32 %v1083_v48, %v329_v12  ;;  %v523_v15 = vadd.f32 %v515_v43, %v497_v10  ;;  %v568_v11 = vmul.f32 %v1088_v50, %v329_v12  ;;  %v508_v29 = vld [vmem:[#allocation2 + $0xc9] sm:$0xff]  ;;  %v587_v40 = vld [vmem:[#allocation2 + $0xe1] sm:$0xff] }
  0xbd   : > { %v574_v49 = vadd.f32 %v566_v46, %v548_v17  ;;  %v601_v57 = vadd.f32 %v593_v44, %v575_v28  ;;  %v387_v60 = vmul.f32 %v1048_v16, %v377_v53  ;;  %v464_v61 = vmul.f32 %v1069_v35, %v377_v53 }
  0xbe   : > { %v542_v39 = vmul.f32 %v1103_v58, %v377_v53  ;;  %v466_v4 = vmul.f32 %v1069_v35, %v456_v0  ;;  %v492_v20 = vmul.f32 %v1083_v48, %v1175_v13  ;;  %v611_v5 = vadd.f32 %v1173_v1, %v599_v63 }
  0xbf   : > { %v600_v7 = vadd.f32 %v592_v51, %v574_v49  ;;  %v421_v21 = vadd.f32 %v413_v45, %v387_v60  ;;  %v439_v12 = vmul.f32 %v1062_v26, %v429_v55  ;;  %v472_v22 = vadd.f32 %v464_v61, %v446_v47 }
  0xc0   : > { %v516_v16 = vmul.f32 %v1096_v54, %v429_v55  ;;  %v550_v25 = vadd.f32 %v542_v39, %v523_v15  ;;  %v594_v24 = vmul.f32 %v1108_v59, %v429_v55  ;;  %v474_v27 = vadd.f32 %v466_v4, %v448_v3 }
  0xc1   : > { %v612_v6 = vadd.f32 %v1173_v1, %v600_v7  ;;  %v447_v30 = vadd.f32 %v439_v12, %v421_v21  ;;  %v498_v48 = vadd.f32 %v490_v56, %v472_v22  ;;  %v613_v23 = vadd.f32 %v1173_v1, %v601_v57 }
  0xc2   : > { %v576_v8 = vadd.f32 %v568_v11, %v550_v25  ;;  %v500_v32 = vadd.f32 %v492_v20, %v474_v27  ;;  %v518_v34 = vmul.f32 %v1096_v54, %v508_v29  ;;  %v619_v26 = vmax.f32 %v611_v5, 0.0 }
  0xc3   : > { %v620_v35 = vmax.f32 %v612_v6, 0.0  ;;  %v543_v37 = vmul.f32 %v1103_v58, %v1148_v31  ;;  %v473_v33 = vadd.f32 %v465_v9, %v447_v30  ;;  %v524_v38 = vadd.f32 %v516_v16, %v498_v48 }
  0xc4   : > { %v621_v14 = vmax.f32 %v613_v23, 0.0  ;;  %v602_v62 = vadd.f32 %v594_v24, %v576_v8  ;;  %v526_v2 = vadd.f32 %v518_v34, %v500_v32  ;;  %v571_v10 = vmul.f32 0.0, %v1088_v50  ;;  %627 = vst [vmem:[%s1204_s10 + $0x8] sm:$0xff] %v619_v26 }
  0xc5   : > { %628 = vst [vmem:[%s1204_s10 + $0x10] sm:$0xff] %v620_v35  ;;  %v634_v36 = vadd.f32 %v619_v26, %v618_v41  ;;  %v517_v43 = vmul.f32 %v1096_v54, %v1177_v19  ;;  %v569_v44 = vmul.f32 %v1088_v50, %v1074_v42  ;;  %v551_v17 = vadd.f32 %v543_v37, %v524_v38 }
  0xc6   : > { %v499_v31 = vadd.f32 %v1141_v18, %v473_v33  ;;  %629 = vst [vmem:[%s1204_s10 + $0x18] sm:$0xff] %v621_v14  ;;  %v614_v46 = vadd.f32 %v1173_v1, %v602_v62  ;;  %v553_v47 = vadd.f32 %v545_v52, %v526_v2  ;;  %v597_v9 = vmul.f32 %v1108_v59, %v587_v40 }
  0xc7   : > { %v635_v63 = vadd.f32 %v634_v36, %v620_v35  ;;  %v595_v41 = vmul.f32 %v1108_v59, %v1177_v19  ;;  %v577_v28 = vadd.f32 %v569_v44, %v551_v17  ;;  %v544_v54 = vmul.f32 %v1103_v58, %v456_v0 }
  0xc8   : > { %v525_v3 = vadd.f32 %v517_v43, %v499_v31  ;;  %v622_v42 = vmax.f32 %v614_v46, 0.0  ;;  %v579_v49 = vadd.f32 %v571_v10, %v553_v47  ;;  %v570_v52 = vmul.f32 %v1088_v50, %v1175_v13 }
  0xc9   : > { %v636_v18 = vadd.f32 %v635_v63, %v621_v14  ;;  %v603_v51 = vadd.f32 %v595_v41, %v577_v28  ;;  %v596_v58 = vmul.f32 %v1108_v59, %v508_v29 }
  0xca   : > { %v552_v53 = vadd.f32 %v544_v54, %v525_v3  ;;  %v605_v45 = vadd.f32 %v597_v9, %v579_v49  ;;  %630 = vst [vmem:[%s1204_s10 + $0x20] sm:$0xff] %v622_v42 }
  0xcb   : > { %v615_v55 = vadd.f32 %v1173_v1, %v603_v51  ;;  %v637_v56 = vadd.f32 %v636_v18, %v622_v42 }
  0xcc   : > { %v578_v19 = vadd.f32 %v570_v52, %v552_v53  ;;  %v617_v15 = vadd.f32 %v1173_v1, %v605_v45 }
  0xcd   : > { %v623_v7 = vmax.f32 %v615_v55, 0.0 }
  0xce   : > { %v604_v11 = vadd.f32 %v596_v58, %v578_v19  ;;  %v625_v50 = vmax.f32 %v617_v15, 0.0 }
  0xcf   : > { %631 = vst [vmem:[%s1204_s10 + $0x28] sm:$0xff] %v623_v7  ;;  %v638_v57 = vadd.f32 %v637_v56, %v623_v7 }
  0xd0   : > { %v616_v13 = vadd.f32 %v1173_v1, %v604_v11  ;;  %633 = vst [vmem:[%s1204_s10 + $0x38] sm:$0xff] %v625_v50 }
  0xd2   : > { %v624_v59 = vmax.f32 %v616_v13, 0.0 }
  0xd4   : > { %632 = vst [vmem:[%s1204_s10 + $0x30] sm:$0xff] %v624_v59  ;;  %v639_v60 = vadd.f32 %v638_v57, %v624_v59 }
  0xd5   : > { %877 = shalt.err (!%p874_p3)
}
  0xd6   : > { %s947_s10 = smov 128   ;;  %s948_s12 = smov 8   ;;  %v640_v1 = vadd.f32 %v639_v60, %v625_v50 }
  0xd7   : > { %792 = dma.vmem_to_hbm [thread:$0]  (%p1022_p5), %s666_s15, 1024, %s668_s16, %s649_s17, %s947_s10, %s947_s10, %s948_s12  }
  0xd8   : > { %v641_v61 = vrot.slane %v640_v1, 4  ;;  %s679_s18 = scalar_lea.hbm %s1306_s6, %s1005_s25  ;;  %s254_s19 = scalar_lea.vmem [#allocation5], %s1167_s26 }
  0xd9   : > { %s681_s20 = sshll.u32 %s254_s19, 4  ;;  %s683_s28 = sshll.u32 %s679_s18, 4  ;;  %s682_s20 = int_to_ptr.vmem [resolvable:$true] %s681_s20  ;;  %s684_s28 = int_to_ptr.hbm [resolvable:$true] %s683_s28 }
  0xda   : > { %v642_v0 = vadd.f32 %v641_v61, %v640_v1  ;;  %s654_s29 = scalar_lea.sflag [#allocation6], %s1167_s26  ;;  %s892_s15 = sshra.s32 %s684_s28, 4  ;;  %s893_s15 = int_to_ptr.hbm [resolvable:$true] %s892_s15 }
  0xdb   : > { %s894_s16 = scalar_lea.hbm %s893_s15, 1  ;;  %s898_s25 = scalar_lea.hbm %s1306_s6, 2 }
  0xdc   : > { %v643_v39 = vrot.slane %v642_v0, 2  ;;  %p895_p4 = scmp.ne.s32.totalorder %s893_s15, %s894_s16  ;;  %p899_p9 = scmp.lt.s32.totalorder %s893_s15, %s1306_s6 }
  0xdd   : > { %p900_p10 = scmp.lt.s32.totalorder %s898_s25, %s894_s16 }
  0xde   : > { %v644_v4 = vadd.f32 %v643_v39, %v642_v0  ;;  %p896_p7 = pnand %p895_p4, %p1022_p5 }
  0xdf   : > { %p901_p11 = por %p900_p10, %p899_p9 }
  0xe0   : > { %v645_v20 = vrot.slane %v644_v4, 1  ;;  %p897_p8 = pneg %p896_p7 }
  0xe2   : > { %v646_v5 = vadd.f32 %v645_v20, %v644_v4  ;;  %p902_p12 = pnand %p901_p11, %p897_p8 }
  0xe4   : > { %647 = vst [vmem:[%s254_s19] sm:$0x1] %v646_v5 }
  0xe5   : > { %905 = shalt.err (!%p902_p12)
}
  0xe6   : > { %793 = dma.vmem_to_hbm [thread:$0]  (%p1022_p5), %s682_s20, 16, %s684_s28, %s654_s29  }
  0xe7 PF: > { %p803_p13 = scmp.ge.s32.totalorder %s944_s24, 2  ;;  %s695_s26 = sand.u32 1, %s932_s21  }
  0xe8   : > { %s696_s12 = scalar_lea.sflag [#allocation4], %s695_s26 }
  0xe9   : > { %p797_p0 = pnand %p803_p13, %p1026_p6 }
  0xeb   : > { %p798_p1 = pneg %p797_p0 }
  0xed   : > { %923 = dma.done.wait (%p798_p1), %s696_s12, 1024  }
  0xee   : > { %925 = vsyncadd (%p798_p1), %s696_s12, 4294966272  ;;  %s706_s13 = scalar_lea.sflag [#allocation6], %s695_s26 }
  0xef   : > { %927 = dma.done.wait (%p798_p1), %s706_s13, 16  }
  0xf0   : > { %929 = vsyncadd (%p798_p1), %s706_s13, 4294967280  ;;  %p20_p5 = scmp.ge.s32.totalorder %s1009_s27, 4   ;;  %s1309_s21 = smov %s936_s22 }
  0xf1   : > { %s1310_s22 = smov %s940_s23  ;;  %s1311_s23 = smov %s1020_s30 }
  0xf2   : > { %s1312_s24 = smov %s1009_s27  ;;  %22 = sbr.rel (!%p20_p5) target bundleno = 5 (0x5), region = 94 }
  0xf7   :  { %711 = vsyncpa [#allocation4], 1 }
  0xf8   :  { %713 = vsyncpa [#allocation4 + $0x1], 1 }
  0xf9   :  { %714 = vsyncpa [#allocation6], 1 }
  0xfa   :  { %716 = vsyncpa [#allocation6 + $0x1], 1 }

</bundles_post_ra>
